<compile_context>
chip_gen: v7x
topology: tpu7x:2x2x1
jax: 0.10.0
libtpu: 0.0.40
codegen_flags: <defaults>
</compile_context>

<pallas_src>
import jax
import jax.numpy as jnp
from jax import lax
from jax.experimental import pallas as pl
from jax.experimental.pallas import tpu as pltpu

LN_EPS = 1e-5


def _round_up(x, m):
    return (x + m - 1) // m * m


def _bias_ln_relu(h, b_col, g_col, be_col):
    """bias-add -> LayerNorm (one-pass stats) -> ReLU, feature-major (hdim, n)."""
    h = h + b_col
    inv_h = 1.0 / h.shape[0]
    s1 = jnp.sum(h, axis=0, keepdims=True) * inv_h          # (1, n)
    s2 = jnp.sum(h * h, axis=0, keepdims=True) * inv_h      # (1, n)
    var = s2 - s1 * s1
    hn = (h - s1) * lax.rsqrt(var + LN_EPS)
    return jnp.maximum(hn * g_col + be_col, 0.0)


def qnet_kernel(inv_temp_ref,   # SMEM (1, 1) f32
                V_ref,          # (tile_b, vdim) f32, streamed
                il_ref,         # (1, tile_b) int32, streamed
                W1_ref,         # (hdim, vdim) bf16, resident
                W2_ref,         # (hdim, hdim) bf16, resident
                W3_ref,         # (hdim, hdim) bf16, resident
                P_ref,          # (hdim, 9) f32, resident: b1,g1,be1,b2,g2,be2,b3,g3,be3
                G_ref,          # (hdim_g, vdim) bf16, resident: [W.T ; b ; marginals ; 0pad]
                out_ref):       # (1, tile_b) f32
    f32 = jnp.float32
    bf16 = jnp.bfloat16
    tile_b, vdim = V_ref.shape
    hdim = W1_ref.shape[0]

    inv_t = inv_temp_ref[0, 0]
    V = V_ref[...]                                            # (tile_b, vdim) f32
    P = P_ref[...]                                            # (hdim, 9) f32

    dn_bT = (((1,), (1,)), ((), ()))                          # contract last dims: A @ B.T

    # Layer 1: Linear(vdim -> hdim). MXU consumes V (tile_b, vdim) as transposed
    # RHS, producing the feature-major (hdim, tile_b) activation directly.
    h = lax.dot_general(W1_ref[...], V.astype(bf16), dn_bT,
                        preferred_element_type=f32)           # (hdim, tile_b) f32
    h = _bias_ln_relu(h, P[:, 0:1], P[:, 1:2], P[:, 2:3]).astype(bf16)

    # Layers 2 / 3.
    h = jnp.dot(W2_ref[...], h, preferred_element_type=f32)
    h = _bias_ln_relu(h, P[:, 3:4], P[:, 4:5], P[:, 5:6]).astype(bf16)

    h = jnp.dot(W3_ref[...], h, preferred_element_type=f32)
    h = _bias_ln_relu(h, P[:, 6:7], P[:, 7:8], P[:, 8:9])     # f32 for final reduce

    # In-kernel gather of W[ilist], b[ilist], marginals[ilist] via one-hot MXU matmul.
    ids = il_ref[...]                                         # (1, tile_b) int32
    iota_v = lax.broadcasted_iota(jnp.int32, (vdim, tile_b), 0)
    onehot = (iota_v == ids).astype(bf16)                     # (vdim, tile_b)
    gat = jnp.dot(G_ref[...], onehot,
                  preferred_element_type=f32)                 # (hdim_g, tile_b)
    WgT = gat[0:hdim, :]                                      # (hdim, tile_b)
    bg = gat[hdim:hdim + 1, :]                                # (1, tile_b)
    mg = gat[hdim + 1:hdim + 2, :]                            # (1, tile_b)

    # x = h . W[ilist] + b[ilist]   (lane-dense per-column reduction)
    x_row = jnp.sum(h * WgT, axis=0, keepdims=True) + bg      # (1, tile_b)

    # Zero-row test: count non-zero entries per row via an MXU matvec so the
    # result lands directly in (1, tile_b). Flags are exactly 0/1 -> exact test.
    nz = (V != 0.0).astype(bf16)                              # (tile_b, vdim)
    nnz = lax.dot_general(jnp.ones((1, vdim), bf16), nz, dn_bT,
                          preferred_element_type=f32)         # (1, tile_b)

    # Fused: single sigmoid on the selected logits.
    logit = jnp.where(nnz == 0.0, mg, x_row)
    out_ref[...] = jax.nn.sigmoid(logit * inv_t).astype(out_ref.dtype)


def _vmem_limit_bytes():
    cap = 64 * 1024 * 1024
    try:
        info = pltpu.get_tpu_info()
        cap = int(getattr(info, "vmem_capacity_bytes", cap))
    except Exception:
        pass
    # Leave headroom for compiler scratch / spill; 48 MiB on 64 MiB (v7x-style)
    # parts, up to 112 MiB on 128 MiB (v5e/v6e) parts.
    return min(max(cap - (16 << 20), 32 << 20), 112 << 20)


def qnet_forward(params, V, ilist, temp=1.0, tile_b=1024, interpret=False):
    """Pallas-backed Qnet.forward.  V: (B, vdim) f32, ilist: (B,) int32 -> (B,) f32."""
    B, vdim = V.shape
    hdim = params["W1"].shape[0]          # weights stored (out_features, in_features)
    hdim_g = _round_up(hdim + 2, 8)

    vmem_limit = _vmem_limit_bytes()

    # ---- batch tiling -------------------------------------------------------
    B128 = _round_up(max(B, 1), 128)
    tile_b = max(128, min(_round_up(tile_b, 128), B128))

    def _vmem_need(tb):
        stream = 2 * (tb * vdim * 4 + 2 * 8 * tb * 4)             # V + ilist/out rows, x2 buffers
        resident = 2 * (hdim * vdim * 2 + 2 * hdim * hdim * 2 +
                        hdim * 128 * 4 + hdim_g * vdim * 2)
        interm = 6 * hdim * tb * 4                                  # live (hdim, tb) f32 values
        return stream + resident + interm

    while tile_b > 128 and _vmem_need(tile_b) > (vmem_limit * 3) // 5:
        tile_b -= 128

    # Feed both TensorCores on dual-TC parts: guarantee >= 2 grid steps.
    if B128 >= 256 and B128 <= tile_b:
        tile_b = _round_up(B128 // 2, 128)

    Bp = _round_up(B128, tile_b)
    num_tiles = Bp // tile_b
    pad = Bp - B

    # ---- wrapper-side packing (no HBM-materialized transpose / gather) ------
    # Padded rows of V are zero with ilist padded to 0: they take the (in-range)
    # marginals branch and are sliced off below -- keep the padding value 0.
    Vp = jnp.pad(V.astype(jnp.float32), ((0, pad), (0, 0)))
    ilp = jnp.pad(ilist.astype(jnp.int32), (0, pad)).reshape(1, Bp)

    bf16 = jnp.bfloat16
    W1 = params["W1"].astype(bf16)
    W2 = params["W2"].astype(bf16)
    W3 = params["W3"].astype(bf16)
    P = jnp.stack([params["b1"], params["g1"], params["beta1"],
                   params["b2"], params["g2"], params["beta2"],
                   params["b3"], params["g3"], params["beta3"]],
                  axis=1).astype(jnp.float32)                       # (hdim, 9)
    G = jnp.zeros((hdim_g, vdim), jnp.float32)
    G = G.at[:hdim, :].set(params["W"][:, :, 0].T)                  # rows 0..hdim-1: W.T
    G = G.at[hdim, :].set(params["b"][:, 0, 0])                     # row hdim:   b
    G = G.at[hdim + 1, :].set(params["marginals"])                  # row hdim+1: marginals
    G = G.astype(bf16)

    inv_temp = jnp.full((1, 1), 1.0 / temp, jnp.float32)

    const2 = lambda i: (0, 0)     # resident across all grid steps
    lane = lambda i: (0, i)       # streamed along the batch/lane axis

    smem_spec = pl.BlockSpec(memory_space=pltpu.MemorySpace.SMEM)
    in_specs = [
        smem_spec,                                        # inv_temp
        pl.BlockSpec((tile_b, vdim), lambda i: (i, 0)),   # V
        pl.BlockSpec((1, tile_b), lane),                  # ilist
        pl.BlockSpec((hdim, vdim), const2),               # W1
        pl.BlockSpec((hdim, hdim), const2),               # W2
        pl.BlockSpec((hdim, hdim), const2),               # W3
        pl.BlockSpec((hdim, 9), const2),                  # packed LN/bias params
        pl.BlockSpec((hdim_g, vdim), const2),             # G (gather matrix)
    ]
    out_spec = pl.BlockSpec((1, tile_b), lane)

    flops = 2 * Bp * (hdim * vdim + 2 * hdim * hdim + hdim_g * vdim + vdim) + 12 * Bp * hdim
    bytes_accessed = (Bp * vdim * 4 + 2 * Bp * 4 +
                      (hdim * vdim + 2 * hdim * hdim + hdim_g * vdim) * 2 + hdim * 9 * 4)
    cost = pl.CostEstimate(flops=int(flops), transcendentals=int(6 * Bp),
                           bytes_accessed=int(bytes_accessed))

    out = pl.pallas_call(
        qnet_kernel,
        out_shape=jax.ShapeDtypeStruct((1, Bp), jnp.float32),
        grid=(num_tiles,),
        in_specs=in_specs,
        out_specs=out_spec,
        compiler_params=pltpu.CompilerParams(
            dimension_semantics=("parallel",),            # megacore sharding on dual-TC parts
            vmem_limit_bytes=int(vmem_limit),
        ),
        cost_estimate=cost,
        interpret=interpret,
    )(inv_temp, Vp, ilp, W1, W2, W3, P, G)
    return out[0, :B]


def init_qnet_params(key, vdim, hdim):
    ks = jax.random.split(key, 8)
    return {
        # nn.Linear weights kept in PyTorch (out_features, in_features) orientation.
        "W1": 0.1 * jax.random.normal(ks[0], (hdim, vdim), jnp.float32),
        "b1": 0.05 * jax.random.normal(ks[1], (hdim,), jnp.float32),
        "g1": jnp.ones((hdim,), jnp.float32),
        "beta1": jnp.zeros((hdim,), jnp.float32),
        "W2": 0.1 * jax.random.normal(ks[2], (hdim, hdim), jnp.float32),
        "b2": 0.05 * jax.random.normal(ks[3], (hdim,), jnp.float32),
        "g2": jnp.ones((hdim,), jnp.float32),
        "beta2": jnp.zeros((hdim,), jnp.float32),
        "W3": 0.1 * jax.random.normal(ks[4], (hdim, hdim), jnp.float32),
        "b3": 0.05 * jax.random.normal(ks[5], (hdim,), jnp.float32),
        "g3": jnp.ones((hdim,), jnp.float32),
        "beta3": jnp.zeros((hdim,), jnp.float32),
        # module-specific params
        "W": 0.01 * jax.random.normal(ks[6], (vdim, hdim, 1), jnp.float32),
        "b": jnp.zeros((vdim, 1, 1), jnp.float32),
        "marginals": 0.1 * jax.random.normal(ks[7], (vdim,), jnp.float32),
    }


def qnet_reference_matched(params, V, ilist, temp=1.0):
    """Pure-JAX reference matching the kernel math (bf16 dots/activations/gather,
    one-pass LN variance)."""
    bf16 = jnp.bfloat16
    f32 = jnp.float32

    def block(x, W, b, g, be, cast_out):
        h = jnp.dot(x, W.astype(bf16).T, preferred_element_type=f32) + b
        mu = jnp.mean(h, -1, keepdims=True)
        var = jnp.mean(h * h, -1, keepdims=True) - mu * mu
        y = jnp.maximum((h - mu) * lax.rsqrt(var + LN_EPS) * g + be, 0.0)
        return y.astype(bf16) if cast_out else y

    h = block(V.astype(bf16), params["W1"], params["b1"], params["g1"], params["beta1"], True)
    h = block(h, params["W2"], params["b2"], params["g2"], params["beta2"], True)
    h = block(h, params["W3"], params["b3"], params["g3"], params["beta3"], False)

    Wg = params["W"][ilist, :, 0].astype(bf16).astype(f32)
    bg = params["b"][ilist, 0, 0].astype(bf16).astype(f32)
    mg = params["marginals"][ilist].astype(bf16).astype(f32)
    x = jnp.sum(h * Wg, -1) + bg
    cond = jnp.sum(V != 0.0, axis=1) == 0
    return jax.nn.sigmoid(jnp.where(cond, mg, x) * (1.0 / temp))


def qnet_reference_f32(params, V, ilist, temp=1.0):
    """Pure-f32 reference mirroring the PyTorch forward exactly."""
    def block(x, W, b, g, be):
        h = x @ W.T + b
        mu = jnp.mean(h, -1, keepdims=True)
        var = jnp.mean((h - mu) ** 2, -1, keepdims=True)
        return jnp.maximum(g * (h - mu) / jnp.sqrt(var + LN_EPS) + be, 0.0)

    h = block(V, params["W1"], params["b1"], params["g1"], params["beta1"])
    h = block(h, params["W2"], params["b2"], params["g2"], params["beta2"])
    h = block(h, params["W3"], params["b3"], params["g3"], params["beta3"])
    Wg = params["W"][ilist, :, 0]
    bg = params["b"][ilist, 0, 0]
    x = jnp.sum(h * Wg, -1) + bg
    cond = jnp.sum(jnp.abs(V), 1) == 0
    return jnp.where(cond, jax.nn.sigmoid(params["marginals"][ilist] / temp),
                     jax.nn.sigmoid(x / temp))


if __name__ == "__main__":
    # Small shapes; B=200 gives a 2-step batch grid (exercises multi-tile +
    # the parallel grid axis) with 128-wide lane-dense tiles.
    B, vdim, hdim = 200, 16, 32
    key = jax.random.PRNGKey(0)
    kp, kv, ki = jax.random.split(key, 3)

    params = init_qnet_params(kp, vdim, hdim)

    V = jax.random.normal(kv, (B, vdim), jnp.float32)
    V = V.at[0].set(0.0)      # zero-row / marginals branch, tile 0
    V = V.at[150].set(0.0)    # zero-row / marginals branch, tile 1
    ilist = jax.random.randint(ki, (B,), 0, vdim, dtype=jnp.int32)

    out = qnet_forward(params, V, ilist, temp=1.0)
    out = jax.block_until_ready(out)

    ref_m = qnet_reference_matched(params, V, ilist, temp=1.0)
    ref_f = qnet_reference_f32(params, V, ilist, temp=1.0)

    assert out.shape == (B,)
    assert jnp.allclose(out, ref_m, atol=1e-4, rtol=1e-4), (out, ref_m)
    assert jnp.allclose(out, ref_f, atol=1e-2, rtol=1e-2), (out, ref_f)

    print("KERNEL_OK")
</pallas_src>

<mosaic_0001>
module attributes {stable_mosaic.version = 11 : i64} {
  func.func @qnet_kernel(%arg0: i32, %arg1: memref<1x1xf32, #tpu.memory_space<smem>>, %arg2: memref<128x16xf32, #tpu.memory_space<vmem>>, %arg3: memref<1x128xi32, #tpu.memory_space<vmem>>, %arg4: memref<32x16xbf16, #tpu.memory_space<vmem>>, %arg5: memref<32x32xbf16, #tpu.memory_space<vmem>>, %arg6: memref<32x32xbf16, #tpu.memory_space<vmem>>, %arg7: memref<32x9xf32, #tpu.memory_space<vmem>>, %arg8: memref<40x16xbf16, #tpu.memory_space<vmem>>, %arg9: memref<1x128xf32, #tpu.memory_space<vmem>>) attributes {dimension_semantics = [#tpu.dimension_semantics<parallel>], iteration_bounds = array<i64: 2>, scalar_prefetch = 0 : i64, scratch_operands = 0 : i64, tpu.core_type = #tpu.core_type<tc>, window_params = [{transform_indices = @transform_0, window_bounds = array<i64: 1, 1>}, {transform_indices = @transform_1, window_bounds = array<i64: 128, 16>}, {transform_indices = @transform_2, window_bounds = array<i64: 1, 128>}, {pipeline_mode = #tpu.pipeline_mode<synchronous>, transform_indices = @transform_3, window_bounds = array<i64: 32, 16>}, {pipeline_mode = #tpu.pipeline_mode<synchronous>, transform_indices = @transform_4, window_bounds = array<i64: 32, 32>}, {pipeline_mode = #tpu.pipeline_mode<synchronous>, transform_indices = @transform_5, window_bounds = array<i64: 32, 32>}, {pipeline_mode = #tpu.pipeline_mode<synchronous>, transform_indices = @transform_6, window_bounds = array<i64: 32, 9>}, {pipeline_mode = #tpu.pipeline_mode<synchronous>, transform_indices = @transform_7, window_bounds = array<i64: 40, 16>}, {transform_indices = @transform_8, window_bounds = array<i64: 1, 128>}]} {
    %c0 = arith.constant 0 : index
    %c0_0 = arith.constant 0 : index
    %0 = memref.load %arg1[%c0, %c0_0] : memref<1x1xf32, #tpu.memory_space<smem>>
    %c0_1 = arith.constant 0 : index
    %c0_2 = arith.constant 0 : index
    %1 = vector.load %arg2[%c0_1, %c0_2] : memref<128x16xf32, #tpu.memory_space<vmem>>, vector<128x16xf32>
    %c0_3 = arith.constant 0 : index
    %c0_4 = arith.constant 0 : index
    %2 = vector.load %arg7[%c0_3, %c0_4] : memref<32x9xf32, #tpu.memory_space<vmem>>, vector<32x9xf32>
    %c0_5 = arith.constant 0 : index
    %c0_6 = arith.constant 0 : index
    %3 = vector.load %arg4[%c0_5, %c0_6] : memref<32x16xbf16, #tpu.memory_space<vmem>>, vector<32x16xbf16>
    %4 = arith.truncf %1 : vector<128x16xf32> to vector<128x16xbf16>
    %cst = arith.constant dense<0.000000e+00> : vector<32x128xf32>
    %5 = tpu.matmul %3, %4, %cst {dimension_numbers = #tpu.dot_dimension_numbers<[1], [1], [0], [0], [0, 0, 1, 0], [], []>} : vector<32x16xbf16>, vector<128x16xbf16>, vector<32x128xf32> -> vector<32x128xf32>
    %6 = vector.extract_strided_slice %2 {offsets = [0, 0], sizes = [32, 1], strides = [1, 1]} : vector<32x9xf32> to vector<32x1xf32>
    %7 = vector.extract_strided_slice %2 {offsets = [0, 1], sizes = [32, 1], strides = [1, 1]} : vector<32x9xf32> to vector<32x1xf32>
    %8 = vector.extract_strided_slice %2 {offsets = [0, 2], sizes = [32, 1], strides = [1, 1]} : vector<32x9xf32> to vector<32x1xf32>
    %9 = vector.broadcast %6 : vector<32x1xf32> to vector<32x128xf32>
    %10 = arith.addf %5, %9 : vector<32x128xf32>
    %cst_7 = arith.constant dense<0.000000e+00> : vector<128xf32>
    %11 = vector.multi_reduction <add>, %10, %cst_7 [0] : vector<32x128xf32> to vector<128xf32>
    %12 = vector.shape_cast %11 : vector<128xf32> to vector<1x128xf32>
    %cst_8 = arith.constant 3.125000e-02 : f32
    %13 = vector.broadcast %cst_8 : f32 to vector<1x128xf32>
    %14 = arith.mulf %12, %13 : vector<1x128xf32>
    %15 = arith.mulf %10, %10 : vector<32x128xf32>
    %cst_9 = arith.constant dense<0.000000e+00> : vector<128xf32>
    %16 = vector.multi_reduction <add>, %15, %cst_9 [0] : vector<32x128xf32> to vector<128xf32>
    %17 = vector.shape_cast %16 : vector<128xf32> to vector<1x128xf32>
    %cst_10 = arith.constant 3.125000e-02 : f32
    %18 = vector.broadcast %cst_10 : f32 to vector<1x128xf32>
    %19 = arith.mulf %17, %18 : vector<1x128xf32>
    %20 = arith.mulf %14, %14 : vector<1x128xf32>
    %21 = arith.subf %19, %20 : vector<1x128xf32>
    %22 = vector.broadcast %14 : vector<1x128xf32> to vector<32x128xf32>
    %23 = arith.subf %10, %22 : vector<32x128xf32>
    %cst_11 = arith.constant 9.99999974E-6 : f32
    %24 = vector.broadcast %cst_11 : f32 to vector<1x128xf32>
    %25 = arith.addf %21, %24 : vector<1x128xf32>
    %26 = math.rsqrt %25 : vector<1x128xf32>
    %27 = vector.broadcast %26 : vector<1x128xf32> to vector<32x128xf32>
    %28 = arith.mulf %23, %27 : vector<32x128xf32>
    %29 = vector.broadcast %7 : vector<32x1xf32> to vector<32x128xf32>
    %30 = arith.mulf %28, %29 : vector<32x128xf32>
    %31 = vector.broadcast %8 : vector<32x1xf32> to vector<32x128xf32>
    %32 = arith.addf %30, %31 : vector<32x128xf32>
    %cst_12 = arith.constant 0.000000e+00 : f32
    %33 = vector.broadcast %cst_12 : f32 to vector<32x128xf32>
    %34 = arith.maximumf %32, %33 : vector<32x128xf32>
    %35 = arith.truncf %34 : vector<32x128xf32> to vector<32x128xbf16>
    %c0_13 = arith.constant 0 : index
    %c0_14 = arith.constant 0 : index
    %36 = vector.load %arg5[%c0_13, %c0_14] : memref<32x32xbf16, #tpu.memory_space<vmem>>, vector<32x32xbf16>
    %cst_15 = arith.constant dense<0.000000e+00> : vector<32x128xf32>
    %37 = tpu.matmul %36, %35, %cst_15 {dimension_numbers = #tpu.dot_dimension_numbers<[1], [0], [0], [1], [0, 0, 1, 1], [], []>} : vector<32x32xbf16>, vector<32x128xbf16>, vector<32x128xf32> -> vector<32x128xf32>
    %38 = vector.extract_strided_slice %2 {offsets = [0, 3], sizes = [32, 1], strides = [1, 1]} : vector<32x9xf32> to vector<32x1xf32>
    %39 = vector.extract_strided_slice %2 {offsets = [0, 4], sizes = [32, 1], strides = [1, 1]} : vector<32x9xf32> to vector<32x1xf32>
    %40 = vector.extract_strided_slice %2 {offsets = [0, 5], sizes = [32, 1], strides = [1, 1]} : vector<32x9xf32> to vector<32x1xf32>
    %41 = vector.broadcast %38 : vector<32x1xf32> to vector<32x128xf32>
    %42 = arith.addf %37, %41 : vector<32x128xf32>
    %cst_16 = arith.constant dense<0.000000e+00> : vector<128xf32>
    %43 = vector.multi_reduction <add>, %42, %cst_16 [0] : vector<32x128xf32> to vector<128xf32>
    %44 = vector.shape_cast %43 : vector<128xf32> to vector<1x128xf32>
    %cst_17 = arith.constant 3.125000e-02 : f32
    %45 = vector.broadcast %cst_17 : f32 to vector<1x128xf32>
    %46 = arith.mulf %44, %45 : vector<1x128xf32>
    %47 = arith.mulf %42, %42 : vector<32x128xf32>
    %cst_18 = arith.constant dense<0.000000e+00> : vector<128xf32>
    %48 = vector.multi_reduction <add>, %47, %cst_18 [0] : vector<32x128xf32> to vector<128xf32>
    %49 = vector.shape_cast %48 : vector<128xf32> to vector<1x128xf32>
    %cst_19 = arith.constant 3.125000e-02 : f32
    %50 = vector.broadcast %cst_19 : f32 to vector<1x128xf32>
    %51 = arith.mulf %49, %50 : vector<1x128xf32>
    %52 = arith.mulf %46, %46 : vector<1x128xf32>
    %53 = arith.subf %51, %52 : vector<1x128xf32>
    %54 = vector.broadcast %46 : vector<1x128xf32> to vector<32x128xf32>
    %55 = arith.subf %42, %54 : vector<32x128xf32>
    %cst_20 = arith.constant 9.99999974E-6 : f32
    %56 = vector.broadcast %cst_20 : f32 to vector<1x128xf32>
    %57 = arith.addf %53, %56 : vector<1x128xf32>
    %58 = math.rsqrt %57 : vector<1x128xf32>
    %59 = vector.broadcast %58 : vector<1x128xf32> to vector<32x128xf32>
    %60 = arith.mulf %55, %59 : vector<32x128xf32>
    %61 = vector.broadcast %39 : vector<32x1xf32> to vector<32x128xf32>
    %62 = arith.mulf %60, %61 : vector<32x128xf32>
    %63 = vector.broadcast %40 : vector<32x1xf32> to vector<32x128xf32>
    %64 = arith.addf %62, %63 : vector<32x128xf32>
    %cst_21 = arith.constant 0.000000e+00 : f32
    %65 = vector.broadcast %cst_21 : f32 to vector<32x128xf32>
    %66 = arith.maximumf %64, %65 : vector<32x128xf32>
    %67 = arith.truncf %66 : vector<32x128xf32> to vector<32x128xbf16>
    %c0_22 = arith.constant 0 : index
    %c0_23 = arith.constant 0 : index
    %68 = vector.load %arg6[%c0_22, %c0_23] : memref<32x32xbf16, #tpu.memory_space<vmem>>, vector<32x32xbf16>
    %cst_24 = arith.constant dense<0.000000e+00> : vector<32x128xf32>
    %69 = tpu.matmul %68, %67, %cst_24 {dimension_numbers = #tpu.dot_dimension_numbers<[1], [0], [0], [1], [0, 0, 1, 1], [], []>} : vector<32x32xbf16>, vector<32x128xbf16>, vector<32x128xf32> -> vector<32x128xf32>
    %70 = vector.extract_strided_slice %2 {offsets = [0, 6], sizes = [32, 1], strides = [1, 1]} : vector<32x9xf32> to vector<32x1xf32>
    %71 = vector.extract_strided_slice %2 {offsets = [0, 7], sizes = [32, 1], strides = [1, 1]} : vector<32x9xf32> to vector<32x1xf32>
    %72 = vector.extract_strided_slice %2 {offsets = [0, 8], sizes = [32, 1], strides = [1, 1]} : vector<32x9xf32> to vector<32x1xf32>
    %73 = vector.broadcast %70 : vector<32x1xf32> to vector<32x128xf32>
    %74 = arith.addf %69, %73 : vector<32x128xf32>
    %cst_25 = arith.constant dense<0.000000e+00> : vector<128xf32>
    %75 = vector.multi_reduction <add>, %74, %cst_25 [0] : vector<32x128xf32> to vector<128xf32>
    %76 = vector.shape_cast %75 : vector<128xf32> to vector<1x128xf32>
    %cst_26 = arith.constant 3.125000e-02 : f32
    %77 = vector.broadcast %cst_26 : f32 to vector<1x128xf32>
    %78 = arith.mulf %76, %77 : vector<1x128xf32>
    %79 = arith.mulf %74, %74 : vector<32x128xf32>
    %cst_27 = arith.constant dense<0.000000e+00> : vector<128xf32>
    %80 = vector.multi_reduction <add>, %79, %cst_27 [0] : vector<32x128xf32> to vector<128xf32>
    %81 = vector.shape_cast %80 : vector<128xf32> to vector<1x128xf32>
    %cst_28 = arith.constant 3.125000e-02 : f32
    %82 = vector.broadcast %cst_28 : f32 to vector<1x128xf32>
    %83 = arith.mulf %81, %82 : vector<1x128xf32>
    %84 = arith.mulf %78, %78 : vector<1x128xf32>
    %85 = arith.subf %83, %84 : vector<1x128xf32>
    %86 = vector.broadcast %78 : vector<1x128xf32> to vector<32x128xf32>
    %87 = arith.subf %74, %86 : vector<32x128xf32>
    %cst_29 = arith.constant 9.99999974E-6 : f32
    %88 = vector.broadcast %cst_29 : f32 to vector<1x128xf32>
    %89 = arith.addf %85, %88 : vector<1x128xf32>
    %90 = math.rsqrt %89 : vector<1x128xf32>
    %91 = vector.broadcast %90 : vector<1x128xf32> to vector<32x128xf32>
    %92 = arith.mulf %87, %91 : vector<32x128xf32>
    %93 = vector.broadcast %71 : vector<32x1xf32> to vector<32x128xf32>
    %94 = arith.mulf %92, %93 : vector<32x128xf32>
    %95 = vector.broadcast %72 : vector<32x1xf32> to vector<32x128xf32>
    %96 = arith.addf %94, %95 : vector<32x128xf32>
    %cst_30 = arith.constant 0.000000e+00 : f32
    %97 = vector.broadcast %cst_30 : f32 to vector<32x128xf32>
    %98 = arith.maximumf %96, %97 : vector<32x128xf32>
    %c0_31 = arith.constant 0 : index
    %c0_32 = arith.constant 0 : index
    %99 = vector.load %arg3[%c0_31, %c0_32] : memref<1x128xi32, #tpu.memory_space<vmem>>, vector<1x128xi32>
    %100 = tpu.iota {dimensions = array<i32: 0>} : vector<16x128xi32>
    %101 = vector.broadcast %99 : vector<1x128xi32> to vector<16x128xi32>
    %102 = arith.cmpi eq, %100, %101 : vector<16x128xi32>
    %103 = arith.extui %102 : vector<16x128xi1> to vector<16x128xi32>
    %104 = arith.sitofp %103 : vector<16x128xi32> to vector<16x128xf32>
    %105 = arith.truncf %104 : vector<16x128xf32> to vector<16x128xbf16>
    %c0_33 = arith.constant 0 : index
    %c0_34 = arith.constant 0 : index
    %106 = vector.load %arg8[%c0_33, %c0_34] : memref<40x16xbf16, #tpu.memory_space<vmem>>, vector<40x16xbf16>
    %cst_35 = arith.constant dense<0.000000e+00> : vector<40x128xf32>
    %107 = tpu.matmul %106, %105, %cst_35 {dimension_numbers = #tpu.dot_dimension_numbers<[1], [0], [0], [1], [0, 0, 1, 1], [], []>} : vector<40x16xbf16>, vector<16x128xbf16>, vector<40x128xf32> -> vector<40x128xf32>
    %108 = vector.extract_strided_slice %107 {offsets = [0, 0], sizes = [32, 128], strides = [1, 1]} : vector<40x128xf32> to vector<32x128xf32>
    %109 = vector.extract_strided_slice %107 {offsets = [32, 0], sizes = [1, 128], strides = [1, 1]} : vector<40x128xf32> to vector<1x128xf32>
    %110 = vector.extract_strided_slice %107 {offsets = [33, 0], sizes = [1, 128], strides = [1, 1]} : vector<40x128xf32> to vector<1x128xf32>
    %111 = arith.mulf %98, %108 : vector<32x128xf32>
    %cst_36 = arith.constant dense<0.000000e+00> : vector<128xf32>
    %112 = vector.multi_reduction <add>, %111, %cst_36 [0] : vector<32x128xf32> to vector<128xf32>
    %113 = vector.shape_cast %112 : vector<128xf32> to vector<1x128xf32>
    %114 = arith.addf %113, %109 : vector<1x128xf32>
    %cst_37 = arith.constant 0.000000e+00 : f32
    %115 = vector.broadcast %cst_37 : f32 to vector<128x16xf32>
    %116 = arith.cmpf one, %1, %115 : vector<128x16xf32>
    %117 = arith.extui %116 : vector<128x16xi1> to vector<128x16xi32>
    %118 = arith.sitofp %117 : vector<128x16xi32> to vector<128x16xf32>
    %119 = arith.truncf %118 : vector<128x16xf32> to vector<128x16xbf16>
    %cst_38 = arith.constant 1.000000e+00 : bf16
    %120 = vector.broadcast %cst_38 : bf16 to vector<1x16xbf16>
    %cst_39 = arith.constant dense<0.000000e+00> : vector<1x128xf32>
    %121 = tpu.matmul %120, %119, %cst_39 {dimension_numbers = #tpu.dot_dimension_numbers<[1], [1], [0], [0], [0, 0, 1, 0], [], []>} : vector<1x16xbf16>, vector<128x16xbf16>, vector<1x128xf32> -> vector<1x128xf32>
    %cst_40 = arith.constant 0.000000e+00 : f32
    %122 = vector.broadcast %cst_40 : f32 to vector<1x128xf32>
    %123 = arith.cmpf oeq, %121, %122 : vector<1x128xf32>
    %124 = arith.select %123, %110, %114 : vector<1x128xi1>, vector<1x128xf32>
    %125 = vector.broadcast %0 : f32 to vector<1x128xf32>
    %126 = arith.mulf %124, %125 : vector<1x128xf32>
    %127 = arith.negf %126 : vector<1x128xf32>
    %128 = math.exp %127 : vector<1x128xf32>
    %cst_41 = arith.constant 1.000000e+00 : f32
    %129 = vector.broadcast %cst_41 : f32 to vector<1x128xf32>
    %130 = arith.addf %129, %128 : vector<1x128xf32>
    %131 = arith.divf %129, %130 : vector<1x128xf32>
    %c0_42 = arith.constant 0 : index
    %c0_43 = arith.constant 0 : index
    %132 = vector.load %arg9[%c0_42, %c0_43] : memref<1x128xf32, #tpu.memory_space<vmem>>, vector<1x128xf32>
    tpu.vector_store %arg9[%c0_42, %c0_43], %131 {strides = array<i32>} : memref<1x128xf32, #tpu.memory_space<vmem>>, vector<1x128xf32>,
    return
  }
  func.func @transform_0(%arg0: i32) -> (i32, i32) {
    %c0_i32 = arith.constant 0 : i32
    %c0_i32_0 = arith.constant 0 : i32
    %c0_i32_1 = arith.constant 0 : i32
    return %c0_i32, %c0_i32_0 : i32, i32
  }
  func.func @transform_1(%arg0: i32) -> (i32, i32) {
    %c0_i32 = arith.constant 0 : i32
    %c0_i32_0 = arith.constant 0 : i32
    return %arg0, %c0_i32 : i32, i32
  }
  func.func @transform_2(%arg0: i32) -> (i32, i32) {
    %c0_i32 = arith.constant 0 : i32
    %c0_i32_0 = arith.constant 0 : i32
    return %c0_i32, %arg0 : i32, i32
  }
  func.func @transform_3(%arg0: i32) -> (i32, i32) {
    %c0_i32 = arith.constant 0 : i32
    %c0_i32_0 = arith.constant 0 : i32
    %c0_i32_1 = arith.constant 0 : i32
    return %c0_i32, %c0_i32_0 : i32, i32
  }
  func.func @transform_4(%arg0: i32) -> (i32, i32) {
    %c0_i32 = arith.constant 0 : i32
    %c0_i32_0 = arith.constant 0 : i32
    %c0_i32_1 = arith.constant 0 : i32
    return %c0_i32, %c0_i32_0 : i32, i32
  }
  func.func @transform_5(%arg0: i32) -> (i32, i32) {
    %c0_i32 = arith.constant 0 : i32
    %c0_i32_0 = arith.constant 0 : i32
    %c0_i32_1 = arith.constant 0 : i32
    return %c0_i32, %c0_i32_0 : i32, i32
  }
  func.func @transform_6(%arg0: i32) -> (i32, i32) {
    %c0_i32 = arith.constant 0 : i32
    %c0_i32_0 = arith.constant 0 : i32
    %c0_i32_1 = arith.constant 0 : i32
    return %c0_i32, %c0_i32_0 : i32, i32
  }
  func.func @transform_7(%arg0: i32) -> (i32, i32) {
    %c0_i32 = arith.constant 0 : i32
    %c0_i32_0 = arith.constant 0 : i32
    %c0_i32_1 = arith.constant 0 : i32
    return %c0_i32, %c0_i32_0 : i32, i32
  }
  func.func @transform_8(%arg0: i32) -> (i32, i32) {
    %c0_i32 = arith.constant 0 : i32
    %c0_i32_0 = arith.constant 0 : i32
    return %c0_i32, %arg0 : i32, i32
  }
}

</mosaic_0001>

<bundles_post_ra>
// kernel: tpu_custom_call.1
= control target key start
LH: loop header
LB: loop body
LE: loop exit
PB: predicated region body
PF: predicated region fallthrough
CT: control target
= control target key end

     0   :  { %s1962_s0 = inlined_call_operand.<no memory space> [shape: f32[1,1], index: 0, kind: input, shape index: {}]   ;;  %s1963_s1 = inlined_call_operand.vmem [shape: f32[256,16], index: 1, kind: input, shape index: {}]   ;;  %s1964_s2 = inlined_call_operand.vmem [shape: s32[1,256], index: 2, kind: input, shape index: {}]   ;;  %s1965_s3 = inlined_call_operand.vmem [shape: bf16[32,16], index: 3, kind: input, shape index: {}]   ;;  %s1966_s4 = inlined_call_operand.vmem [shape: bf16[32,32], index: 4, kind: input, shape index: {}]   ;;  %s1967_s5 = inlined_call_operand.vmem [shape: bf16[32,32], index: 5, kind: input, shape index: {}]   ;;  %s1968_s6 = inlined_call_operand.vmem [shape: f32[32,9], index: 6, kind: input, shape index: {}]   ;;  %s1969_s7 = inlined_call_operand.vmem [shape: bf16[40,16], index: 7, kind: input, shape index: {}]   ;;  %s1970_s8 = inlined_call_operand.hbm [shape: f32[1,256], index: 8, kind: output, shape index: {}]  }
   0x1   :  { %13 = sst [smem:[#allocation2]] %s1962_s0 }
   0x2   :  { %14 = vsyncpa [#allocation4], 0 }
   0x3   :  { %16 = vsyncpa [#allocation4 + $0x1], 0  ;;  %s1586_s29 = smov 0   ;;  %s1588_s30 = smov 0  }
   0x4   :  { %s1590_s9 = smov 0   ;;  %s1592_s10 = smov 0  }
   0x5 LB: > { %s1607_s0 = sadd.s32 4294967295, %s1522_s10   ;;  %s1206_s11 = sadd.s32 4294967294, %s1522_s10   ;;  %s1522_s10 = sphi %s1592_s10, %s1976_s10   ;;  %s1518_s9 = sphi %s1590_s9, %s1975_s9   ;;  %s1514_s30 = sphi %s1588_s30, %s1974_s30   ;;  %s1510_s29 = sphi %s1586_s29, %s1973_s29  }
   0x6   : > { %s1611_s12 = sadd.s32 1, %s1522_s10   ;;  %s207_s13 = sadd.s32 1, %s1518_s9 }
   0x7   : > { %s204_s14 = ssub.s32 %s1522_s10, %s1611_s12  ;;  %p217_p0 = scmp.ne.s32.totalorder %s1518_s9, %s1514_s30 }
   0x8   : > { %p205_p1 = scmp.eq.s32.totalorder %s204_s14, 0  ;;  %p218_p2 = scmp.eq.s32.totalorder %s1607_s0, 1 }
   0x9   : > { %p223_p3 = scmp.ne.s32.totalorder %s1514_s30, %s1510_s29  ;;  %p224_p4 = scmp.eq.s32.totalorder %s1206_s11, 1 }
   0xa   : > { %s1622_s15 = scalar_select %p205_p1, %s1518_s9, %s207_s13  }
   0xb   : > { %p1624_p5 = por %p218_p2, %p217_p0  ;;  %p1628_p6 = por %p224_p4, %p223_p3 }
   0xc   : > { %p1209_p7 = scmp.ge.s32.totalorder %s1522_s10, 1  ;;  %p275_p8 = scmp.lt.s32.totalorder %s1522_s10, 3 }
   0xe   : > { %p276_p9 = pnand %p1209_p7, %p275_p8 }
   0xf   : > { %s1635_s18 = sshll.u32 (!%p276_p9), %s1607_s0, 4  ;;  %v1441_v0 = vld [vmem:[%s1965_s3] sm:$0xff] (!%p276_p9)   ;;  %vm385_vm0 = vcmask (!%p276_p9), 130048   ;;  %v1650_v2 = vld [vmem:[%s1968_s6 + $0x10] sm:$0xff] (!%p276_p9)  ;;  %v1524_v3 = vmov (!%p276_p9), 0   ;;  %v1656_v4 = vld [vmem:[%s1968_s6 + $0x8] sm:$0xff] (!%p276_p9) }
  0x10   : > { %279 = sbr.rel (%p276_p9) target bundleno = 967 (0x3c7), region = 52  ;;  %p312_p10 = scmp.lt.s32.totalorder (!%p276_p9), %s1635_s18, 31  ;;  %1303 = vmatprep.mubr.msk.bf16.mxu0 (!%p276_p9), %vm385_vm0, %v1441_v0  ;;  %v1645_v1 = vld [vmem:[%s1968_s6] sm:$0xff] (!%p276_p9)  ;;  %1417 = vset.pattern.permute.xlu0 (!%p276_p9), %v1524_v3  ;;  %v1663_v5 = vld [vmem:[%s1968_s6 + $0x18] sm:$0xff] (!%p276_p9)  ;;  %v1525_v14 = vmov (!%p276_p9), 1   ;;  %v1526_v18 = vmov (!%p276_p9), 2  }
  0x11   : > { %1418 = vset.pattern.permute.xlu1 (!%p276_p9), %v1524_v3  ;;  %357 = vperm.xlu0 (!%p276_p9), %1417, %v1645_v1   ;;  %v1442_v40 = vld [vmem:[%s1965_s3 + $0x8] sm:$0xff] (!%p276_p9)   ;;  %v1443_v41 = vld [vmem:[%s1966_s4] sm:$0xff] (!%p276_p9)   ;;  %vm577_vm1 = vcmask (!%p276_p9), 261120   ;;  %v1527_v42 = vmov (!%p276_p9), 3   ;;  %v1528_v43 = vmov (!%p276_p9), 4   ;;  %v1529_v44 = vmov (!%p276_p9), 5   ;;  %s1920_s19 = scalar_lea.hbm (!%p276_p9), %s1970_s8, %s1635_s18 }
  0x12   : > { %367 = vperm.xlu1 (!%p276_p9), %1418, %v1650_v2   ;;  %p317_p11 = scmp.lt.s32.totalorder (!%p276_p9), %s1607_s0, 1  ;;  %vm1535_vm7 = vmmov (!%p276_p9), 0   ;;  %s322_s26 = sld [smem:[#allocation2]] (!%p276_p9) }
  0x13   : > { %s309_s27 = sand.u32 (!%p276_p9), 1, %s1514_s30   ;;  %s1537_s21 = smov (!%p276_p9), [#allocation3]  }
  0x14   : > { %s1464_s22 = sshll.u32 (!%p276_p9), %s1537_s21, 4  ;;  %s1465_s22 = int_to_ptr.vmem [resolvable:$false] %s1464_s22 }
  0x15   : > { %362 = vperm.xlu0 (!%p276_p9), %1417, %v1656_v4   ;;  %s1466_s23 = scalar_lea.vmem (!%p276_p9), %s1465_s22, 32 }
  0x16   : > { %372 = vperm.xlu1 (!%p276_p9), %1418, %v1663_v5  }
  0x17   : > { %s313_s25 = scalar_select %p312_p10, %s1635_s18, 31 }
  0x18   : > { %s1978_s0 = smov (!%p317_p11, %s1607_s0), 1 }
  0x19   : > { %s1211_s28 = sshll.u32 %s313_s25, 3  ;;  %1419 = vset.pattern.permute.xlu0 %v1525_v14  ;;  %s319_s14 = scalar_lea.vmem %s1964_s2, %s1978_s0 }
  0x1a   : > { %s1668_s20 = scalar_lea.vmem %s1963_s1, %s1211_s28  ;;  %1420 = vset.pattern.permute.xlu1 %v1525_v14  ;;  %502 = vperm.xlu0 %1419, %v1645_v1   ;;  %s310_s28 = scalar_lea.vmem [#allocation3], %s309_s27 }
  0x1b   : > { %v1671_v6 = vld [vmem:[%s1668_s20] sm:$0xff]  ;;  %v1674_v7 = vld [vmem:[%s1668_s20 + $0x8] sm:$0xff]  ;;  %v1677_v8 = vld [vmem:[%s1668_s20 + $0x10] sm:$0xff]  ;;  %506 = vperm.xlu1 %1420, %v1656_v4   ;;  %s1142_s11 = sshll.u32 %s310_s28, 4  ;;  %s1922_s11 = int_to_ptr.vmem [resolvable:$true] %s1142_s11 }
  0x1c   : > { %v347_v9 = vpack.c.bf16 %v1674_v7, %v1671_v6  ;;  %v1682_v10 = vld [vmem:[%s1668_s20 + $0x18] sm:$0xff]  ;;  %v1692_v13 = vld [vmem:[%s1668_s20 + $0x20] sm:$0xff]  ;;  %v1695_v15 = vld [vmem:[%s1668_s20 + $0x28] sm:$0xff]  ;;  %vm992_vm2 = vcmp.ne.f32.partialorder %v1671_v6, 0.0  ;;  %vm993_vm3 = vcmp.ne.f32.partialorder %v1674_v7, 0.0  ;;  %vm994_vm8 = vcmp.ne.f32.partialorder %v1677_v8, 0.0  ;;  %p1467_p1 = scmp.lt.s32.totalorder %s1922_s11, %s1465_s22 }
  0x1d   : > { %v348_v11 = vpack.c.bf16 %v1682_v10, %v1677_v8  ;;  %v349_v17 = vpack.c.bf16 %v1695_v15, %v1692_v13  ;;  %v1706_v19 = vld [vmem:[%s1668_s20 + $0x30] sm:$0xff]  ;;  %v1709_v20 = vld [vmem:[%s1668_s20 + $0x38] sm:$0xff]  ;;  %v1719_v23 = vld [vmem:[%s1668_s20 + $0x40] sm:$0xff]  ;;  %vm995_vm9 = vcmp.ne.f32.partialorder %v1682_v10, 0.0  ;;  %vm996_vm10 = vcmp.ne.f32.partialorder %v1692_v13, 0.0  ;;  %s1460_s0 = scalar_lea.vmem %s1922_s11, 16 }
  0x1e   : > { %1357 = vmatprep.subr.msk.bf16.mxu0 %vm385_vm0, %v347_v9  ;;  %v393_v12 = vsel %vm385_vm0, %v347_v9, 0  ;;  %1422 = vset.pattern.permute.xlu0 %v1526_v18  ;;  %v350_v22 = vpack.c.bf16 %v1709_v20, %v1706_v19  ;;  %v1722_v24 = vld [vmem:[%s1668_s20 + $0x48] sm:$0xff]  ;;  %v1730_v27 = vld [vmem:[%s1668_s20 + $0x50] sm:$0xff]  ;;  %v1733_v28 = vld [vmem:[%s1668_s20 + $0x58] sm:$0xff]  ;;  %vm997_vm11 = vcmp.ne.f32.partialorder %v1695_v15, 0.0  ;;  %vm998_vm12 = vcmp.ne.f32.partialorder %v1706_v19, 0.0  ;;  %p1461_p12 = scmp.ne.s32.totalorder %s1922_s11, %s1460_s0  ;;  %p1468_p2 = scmp.lt.s32.totalorder %s1466_s23, %s1460_s0 }
  0x1f   : > { %1288 = vmatpush3.bf16.xpose.msra.mxu0 %v393_v12  ;;  %v396_v16 = vsel %vm385_vm0, %v348_v11, 0  ;;  %1421 = vset.pattern.permute.xlu1 %v1526_v18  ;;  %v399_v21 = vsel %vm385_vm0, %v349_v17, 0  ;;  %v351_v26 = vpack.c.bf16 %v1722_v24, %v1719_v23  ;;  %v352_v30 = vpack.c.bf16 %v1733_v28, %v1730_v27  ;;  %v1740_v31 = vld [vmem:[%s1668_s20 + $0x60] sm:$0xff]  ;;  %v1743_v32 = vld [vmem:[%s1668_s20 + $0x68] sm:$0xff]  ;;  %v1750_v35 = vld [vmem:[%s1668_s20 + $0x70] sm:$0xff] }
  0x20   : > { %1358 = vmatprep.subr.msk.bf16.mxu0 %vm385_vm0, %v348_v11  ;;  %522 = vperm.xlu1 %1421, %v1645_v1   ;;  %v402_v25 = vsel %vm385_vm0, %v350_v22, 0  ;;  %v353_v34 = vpack.c.bf16 %v1743_v32, %v1740_v31  ;;  %v1753_v36 = vld [vmem:[%s1668_s20 + $0x78] sm:$0xff]  ;;  %v1448_v10 = vld [vmem:[%s1969_s7 + $0x8] sm:$0xff]   ;;  %v1449_v13 = vld [vmem:[%s1969_s7 + $0x10] ss:$0 sps:$4 sm:$0xff]   ;;  %vm999_vm13 = vcmp.ne.f32.partialorder %v1709_v20, 0.0  ;;  %p1462_p13 = pnand %p1461_p12, %p1624_p5  ;;  %p1469_p3 = por %p1468_p2, %p1467_p1 }
  0x21   : > { %526 = vperm.xlu0 %1422, %v1656_v4   ;;  %v405_v29 = vsel %vm385_vm0, %v351_v26, 0  ;;  %v408_v33 = vsel %vm385_vm0, %v352_v30, 0  ;;  %v354_v38 = vpack.c.bf16 %v1753_v36, %v1750_v35  ;;  %vm1000_vm14 = vcmp.ne.f32.partialorder %v1719_v23, 0.0  ;;  %s1130_s20 = scalar_lea.sflag [#allocation4], %s309_s27 }
  0x22   : > { %v411_v37 = vsel %vm385_vm0, %v353_v34, 0  ;;  %vm1001_vm15 = vcmp.ne.f32.partialorder %v1722_v24, 0.0  ;;  %p1463_p0 = pneg %p1462_p13 }
  0x23   : > { %v414_v39 = vsel %vm385_vm0, %v354_v38, 0 }
  0x24   : > { %1423 = vset.pattern.permute.xlu1 %v1525_v14  ;;  %p1470_p4 = pnand %p1469_p3, %p1463_p0 }
  0x25   : > { %510 = vperm.xlu1 %1423, %v1650_v2   ;;  %530 = vperm.xlu0 %1422, %v1650_v2  }
  0x27   : > { %1290 = vmatpush3.bf16.xpose.msra.mxu0 %v396_v16 }
  0x28   : > { %1359 = vmatprep.subr.msk.bf16.mxu0 %vm385_vm0, %v349_v17 }
  0x29   : > { %514 = vperm.xlu1 %1423, %v1663_v5   ;;  %1425 = vset.pattern.permute.xlu0 %v1527_v42 }
  0x2a   : > { %552 = vperm.xlu0 %1425, %v1645_v1  }
  0x2d   : > { %1424 = vset.pattern.permute.xlu1 %v1526_v18 }
  0x2e   : > { %534 = vperm.xlu1 %1424, %v1663_v5   ;;  %564 = vperm.xlu0 %1425, %v1663_v5  }
  0x2f   : > { %1292 = vmatpush3.bf16.xpose.msra.mxu0 %v399_v21 }
  0x30   : > { %1360 = vmatprep.subr.msk.bf16.mxu0 %vm385_vm0, %v350_v22 }
  0x32   : > { %1426 = vset.pattern.permute.xlu1 %v1527_v42  ;;  %1428 = vset.pattern.permute.xlu0 %v1528_v43 }
  0x33   : > { %556 = vperm.xlu1 %1426, %v1656_v4   ;;  %674 = vperm.xlu0 %1428, %v1656_v4  }
  0x37   : > { %1294 = vmatpush3.bf16.xpose.msra.mxu0 %v402_v25  ;;  %560 = vperm.xlu1 %1426, %v1650_v2  }
  0x38   : > { %1361 = vmatprep.subr.msk.bf16.mxu0 %vm385_vm0, %v351_v26  ;;  %678 = vperm.xlu0 %1428, %v1650_v2  }
  0x3b   : > { %1427 = vset.pattern.permute.xlu1 %v1528_v43 }
  0x3c   : > { %670 = vperm.xlu1 %1427, %v1645_v1   ;;  %1431 = vset.pattern.permute.xlu0 %v1529_v44 }
  0x3d   : > { %698 = vperm.xlu0 %1431, %v1650_v2  }
  0x3f   : > { %1296 = vmatpush3.bf16.xpose.msra.mxu0 %v405_v29 }
  0x40   : > { %1362 = vmatprep.subr.msk.bf16.mxu0 %vm385_vm0, %v352_v30  ;;  %1429 = vset.pattern.permute.xlu1 %v1529_v44 }
  0x41   : > { %690 = vperm.xlu1 %1429, %v1645_v1  }
  0x45   : > { %694 = vperm.xlu1 %1429, %v1656_v4  }
  0x47   : > { %1298 = vmatpush3.bf16.xpose.msra.mxu0 %v408_v33 }
  0x48   : > { %1363 = vmatprep.subr.msk.bf16.mxu0 %vm385_vm0, %v353_v34 }
  0x49   : > { %1430 = vset.pattern.permute.xlu1 %v1528_v43 }
  0x4a   : > { %682 = vperm.xlu1 %1430, %v1663_v5  }
  0x4e   : > { %1432 = vset.pattern.permute.xlu1 %v1529_v44 }
  0x4f   : > { %1300 = vmatpush3.bf16.xpose.msra.mxu0 %v411_v37  ;;  %702 = vperm.xlu1 %1432, %v1663_v5  }
  0x50   : > { %1364 = vmatprep.subr.msk.bf16.mxu0 %vm385_vm0, %v354_v38 }
  0x57   : > { %1302 = vmatpush3.bf16.xpose.msra.mxu0 %v414_v39 }
  0x5e   : > { %1304 = vmatmul.mubr.msk.bf16.vlgmr.msra.gmra.mrb[0].mxu0 %vm385_vm0, %v1442_v40 }
  0x5f   : > { %1311 = vmatprep.mubr.msk.bf16.mxu0 %vm577_vm1, %v1443_v41 }
  0x90   : > { %v358_v45 = vpop.permute.xlu0 %357 }
  0x91   : > { %v368_v46 = vpop.permute.xlu1 %367 }
  0x94   : > { %v363_v49 = vpop.permute.xlu0 %362 }
  0x95   : > { %v373_v52 = vpop.permute.xlu1 %372 }
  0x9a   : > { %v507_v26 = vpop.permute.xlu1 %506 }
  0x9f   : > { %v523_v40 = vpop.permute.xlu1 %522 }
 0x131   : > { %v1305_v47 = vpop.f32.mrb[0].mxu0 }
 0x132   : > { %v450_v48 = vpop.f32.mrb[1].mxu0  ;;  %v459_v54 = vadd.f32 %v1305_v47, %v368_v46  ;;  %v511_v46 = vpop.permute.xlu1 %510 }
 0x133   : > { %v451_v50 = vadd.f32 %v450_v48, %v358_v45  ;;  %v1306_v51 = vpop.f32.mrb[2].mxu0  ;;  %v503_v47 = vpop.permute.xlu0 %502 }
 0x134   : > { %v453_v53 = vpop.f32.mrb[3].mxu0  ;;  %v462_v57 = vadd.f32 %v1306_v51, %v373_v52  ;;  %v477_v60 = vmul.f32 %v459_v54, %v459_v54 }
 0x135   : > { %v454_v55 = vadd.f32 %v453_v53, %v363_v49  ;;  %v475_v56 = vmul.f32 %v451_v50, %v451_v50 }
 0x136   : > { %v478_v63 = vmul.f32 %v462_v57, %v462_v57  ;;  %v515_v48 = vpop.permute.xlu1 %514 }
 0x137   : > { %v465_v58 = vadd.f32 %v454_v55, %v451_v50  ;;  %v476_v59 = vmul.f32 %v454_v55, %v454_v55  ;;  %v527_v49 = vpop.permute.xlu0 %526 }
 0x139   : > { %v466_v61 = vadd.f32 %v465_v58, %v459_v54  ;;  %v479_v62 = vadd.f32 %v476_v59, %v475_v56 }
 0x13a   : > { %v535_v59 = vpop.permute.xlu1 %534 }
 0x13b   : > { %v467_v0 = vadd.f32 %v466_v61, %v462_v57  ;;  %v480_v3 = vadd.f32 %v479_v62, %v477_v60  ;;  %v531_v60 = vpop.permute.xlu0 %530 }
 0x13d   : > { %v468_v9 = vrot.slane %v467_v0, 4  ;;  %v481_v11 = vadd.f32 %v480_v3, %v478_v63 }
 0x13f   : > { %v469_v12 = vadd.f32 %v468_v9, %v467_v0  ;;  %v482_v14 = vrot.slane %v481_v11, 4 }
 0x141   : > { %v470_v16 = vrot.slane %v469_v12, 2  ;;  %v483_v17 = vadd.f32 %v482_v14, %v481_v11 }
 0x143   : > { %v471_v18 = vadd.f32 %v470_v16, %v469_v12  ;;  %v484_v21 = vrot.slane %v483_v17, 2 }
 0x145   : > { %v472_v22 = vrot.slane %v471_v18, 1  ;;  %v485_v25 = vadd.f32 %v484_v21, %v483_v17  ;;  %v1444_v17 = vld [vmem:[%s1966_s4 + $0x8] sm:$0xff]   ;;  %v1530_v21 = vmov 0.0  }
 0x146   : > { %v1243_v20 = vsel %vm1000_vm14, 1.0, %v1530_v21 }
 0x147   : > { %v473_v29 = vadd.f32 %v472_v22, %v471_v18  ;;  %v486_v30 = vrot.slane %v485_v25, 1  ;;  %v1445_v18 = vld [vmem:[%s1967_s5] sm:$0xff]   ;;  %v1791_v22 = vsel %vm992_vm2, 1.0, %v1530_v21  ;;  %vm1003_vm2 = vcmp.ne.f32.partialorder %v1733_v28, 0.0 }
 0x148   : > { %1319 = vmatprep.mubr.msk.bf16.mxu1 %vm577_vm1, %v1445_v18  ;;  %v1246_v24 = vsel %vm1003_vm2, 1.0, %v1530_v21 }
 0x149   : > { %v474_v33 = vmul.f32 0.03125, %v473_v29  ;;  %v487_v34 = vadd.f32 %v486_v30, %v485_v25  ;;  %v1794_v25 = vsel %vm993_vm3, 1.0, %v1530_v21  ;;  %v557_v29 = vpop.permute.xlu1 %556  ;;  %v553_v30 = vpop.permute.xlu0 %552  ;;  %vm1004_vm3 = vcmp.ne.f32.partialorder %v1740_v31, 0.0 }
 0x14b   : > { %v488_v37 = vmul.f32 0.03125, %v487_v34  ;;  %v489_v38 = vmul.f32 %v474_v33, %v474_v33  ;;  %v492_v39 = vsub.f32 %v454_v55, %v474_v33  ;;  %v493_v41 = vsub.f32 %v459_v54, %v474_v33 }
 0x14c   : > { %v491_v42 = vsub.f32 %v451_v50, %v474_v33  ;;  %v494_v43 = vsub.f32 %v462_v57, %v474_v33 }
 0x14d   : > { %v490_v44 = vsub.f32 %v488_v37, %v489_v38  ;;  %v561_v34 = vpop.permute.xlu1 %560  ;;  %v565_v6 = vpop.permute.xlu0 %564 }
 0x14f   : > { %v495_v45 = vadd.f32 1e-05, %v490_v44 }
 0x151   : > { %1450 = vrsqrt.f32 %v495_v45 }
 0x15b   : > { %v1451_v51 = vpop.eup %1450 }
 0x15c   : > { %v498_v52 = vmul.f32 %v1451_v51, %v492_v39  ;;  %v499_v53 = vmul.f32 %v1451_v51, %v493_v41  ;;  %v497_v56 = vmul.f32 %v1451_v51, %v491_v42  ;;  %v500_v58 = vmul.f32 %v1451_v51, %v494_v43 }
 0x15e   : > { %v518_v61 = vmul.f32 %v507_v26, %v498_v52  ;;  %v519_v55 = vmul.f32 %v511_v46, %v499_v53  ;;  %v517_v62 = vmul.f32 %v503_v47, %v497_v56  ;;  %v520_v54 = vmul.f32 %v515_v48, %v500_v58 }
 0x15f   : > { %v1040_v26 = vpack.c.bf16 %v1794_v25, %v1791_v22  ;;  %v1531_v46 = vmov 6   ;;  %v1239_v25 = vsel %vm996_vm10, 1.0, %v1530_v21 }
 0x160   : > { %v537_v50 = vadd.f32 %v523_v40, %v517_v62  ;;  %v538_v57 = vadd.f32 %v527_v49, %v518_v61  ;;  %v540_v63 = vadd.f32 %v535_v59, %v520_v54  ;;  %v539_v0 = vadd.f32 %v531_v60, %v519_v55  ;;  %1433 = vset.pattern.permute.xlu1 %v1531_v46 }
 0x161   : > { %1434 = vset.pattern.permute.xlu0 %v1531_v46  ;;  %720 = vperm.xlu1 %1433, %v1645_v1   ;;  %v1532_v59 = vmov 7   ;;  %v1533_v54 = vmov 8  }
 0x162   : > { %v541_v3 = vmax.f32 %v537_v50, 0.0  ;;  %v542_v9 = vmax.f32 %v538_v57, 0.0  ;;  %v544_v11 = vmax.f32 %v540_v63, 0.0  ;;  %v543_v12 = vmax.f32 %v539_v0, 0.0  ;;  %724 = vperm.xlu0 %1434, %v1656_v4  }
 0x164   : > { %v545_v14 = vpack.c.bf16 %v542_v9, %v541_v3  ;;  %v546_v16 = vpack.c.bf16 %v544_v11, %v543_v12  ;;  %v671_v11 = vpop.permute.xlu1 %670 }
 0x165   : > { %728 = vperm.xlu1 %1433, %v1650_v2  }
 0x166   : > { %1307 = vmatprep.subr.bf16.mxu0 %v545_v14  ;;  %1435 = vset.pattern.permute.xlu0 %v1532_v59 }
 0x167   : > { %1308 = vmatpush3.bf16.msra.mxu0 %v545_v14  ;;  %837 = vperm.xlu0 %1435, %v1645_v1  }
 0x168   : > { %1309 = vmatprep.subr.bf16.mxu0 %v546_v16 }
 0x169   : > { %732 = vperm.xlu1 %1433, %v1663_v5  }
 0x16b   : > { %1310 = vmatpush3.bf16.msra.mxu0 %v546_v16  ;;  %1437 = vset.pattern.permute.xlu0 %v1533_v54 }
 0x16c   : > { %857 = vperm.xlu0 %1437, %v1645_v1  }
 0x16d   : > { %1436 = vset.pattern.permute.xlu1 %v1532_v59 }
 0x16e   : > { %1312 = vmatmul.mubr.msk.bf16.vlgmr.msra.gmra.mrb[4].mxu0 %vm577_vm1, %v1444_v17  ;;  %841 = vperm.xlu1 %1436, %v1656_v4  }
 0x170   : > { %865 = vperm.xlu0 %1437, %v1650_v2  }
 0x172   : > { %845 = vperm.xlu1 %1436, %v1650_v2  }
 0x176   : > { %1438 = vset.pattern.permute.xlu1 %v1533_v54 }
 0x177   : > { %861 = vperm.xlu1 %1438, %v1656_v4  }
 0x17b   : > { %1439 = vset.pattern.permute.xlu1 %v1532_v59 }
 0x17c   : > { %849 = vperm.xlu1 %1439, %v1663_v5  }
 0x180   : > { %1440 = vset.pattern.permute.xlu1 %v1533_v54 }
 0x181   : > { %869 = vperm.xlu1 %1440, %v1663_v5  }
 0x241   : > { %v1313_v33 = vpop.f32.mrb[4].mxu0 }
 0x242   : > { %v618_v37 = vpop.f32.mrb[5].mxu0  ;;  %v1800_v40 = vadd.f32 %v1313_v33, %v561_v34  ;;  %v691_v34 = vpop.permute.xlu1 %690 }
 0x243   : > { %v1798_v38 = vadd.f32 %v618_v37, %v553_v30  ;;  %v1314_v39 = vpop.f32.mrb[6].mxu0 }
 0x244   : > { %v621_v7 = vpop.f32.mrb[7].mxu0  ;;  %v1804_v42 = vadd.f32 %v1314_v39, %v565_v6  ;;  %v645_v47 = vmul.f32 %v1800_v40, %v1800_v40  ;;  %v675_v6 = vpop.permute.xlu0 %674 }
 0x245   : > { %v1802_v41 = vadd.f32 %v621_v7, %v557_v29  ;;  %v643_v43 = vmul.f32 %v1798_v38, %v1798_v38 }
 0x246   : > { %v646_v51 = vmul.f32 %v1804_v42, %v1804_v42  ;;  %v695_v2 = vpop.permute.xlu1 %694 }
 0x247   : > { %v633_v44 = vadd.f32 %v1802_v41, %v1798_v38  ;;  %v644_v45 = vmul.f32 %v1802_v41, %v1802_v41 }
 0x248   : > { %v679_v39 = vpop.permute.xlu0 %678 }
 0x249   : > { %v634_v48 = vadd.f32 %v633_v44, %v1800_v40  ;;  %v647_v49 = vadd.f32 %v644_v45, %v643_v43  ;;  %v881_v45 = vlaneseq }
 0x24b   : > { %v635_v52 = vadd.f32 %v634_v48, %v1804_v42  ;;  %v648_v53 = vadd.f32 %v647_v49, %v645_v47 }
 0x24c   : > { %v699_v4 = vpop.permute.xlu0 %698 }
 0x24d   : > { %v636_v56 = vrot.slane %v635_v52, 4  ;;  %v649_v58 = vadd.f32 %v648_v53, %v646_v51 }
 0x24f   : > { %v637_v60 = vadd.f32 %v636_v56, %v635_v52  ;;  %v650_v61 = vrot.slane %v649_v58, 4 }
 0x251   : > { %v638_v55 = vrot.slane %v637_v60, 2  ;;  %v651_v62 = vadd.f32 %v650_v61, %v649_v58  ;;  %v882_v58 = vshrl.u32 %v881_v45, 7 }
 0x253   : > { %v639_v50 = vadd.f32 %v638_v55, %v637_v60  ;;  %v652_v57 = vrot.slane %v651_v62, 2  ;;  %v883_v54 = vadd.s32 8, %v882_v58 }
 0x255   : > { %v640_v63 = vrot.slane %v639_v50, 1  ;;  %v653_v0 = vadd.f32 %v652_v57, %v651_v62  ;;  %v1446_v57 = vld [vmem:[%s1967_s5 + $0x8] sm:$0xff]  }
 0x257   : > { %v641_v3 = vadd.f32 %v640_v63, %v639_v50  ;;  %v654_v9 = vrot.slane %v653_v0, 1  ;;  %v1224_v50 = vld [vmem:[%s319_s14] ss:$0 sm:$0xff]  ;;  %v1534_v63 = vmov 1.0|1.0  }
 0x258   : > { %vm888_vm4 = vcmp.eq.s32.totalorder %v882_v58, %v1224_v50  ;;  %vm889_vm5 = vcmp.eq.s32.totalorder %v883_v54, %v1224_v50 }
 0x259   : > { %v642_v12 = vmul.f32 0.03125, %v641_v3  ;;  %v655_v14 = vadd.f32 %v654_v9, %v653_v0  ;;  %vm1230_vm6 = vmpackc.low %vm889_vm5, %vm888_vm4  ;;  %v1447_v0 = vld [vmem:[%s1969_s7] sm:$0xff]   ;;  %v1052_v3 = vsel %vm385_vm0, %v1040_v26, 0  ;;  %v1237_v9 = vsel %vm994_vm8, 1.0, %v1530_v21 }
 0x25a   : > { %v1240_v26 = vsel %vm997_vm11, 1.0, %v1530_v21  ;;  %vm1005_vm4 = vcmp.ne.f32.partialorder %v1743_v32, 0.0  ;;  %vm1006_vm5 = vcmp.ne.f32.partialorder %v1750_v35, 0.0 }
 0x25b   : > { %v656_v16 = vmul.f32 0.03125, %v655_v14  ;;  %v657_v17 = vmul.f32 %v642_v12, %v642_v12  ;;  %v659_v18 = vsub.f32 %v1798_v38, %v642_v12  ;;  %v660_v1 = vsub.f32 %v1802_v41, %v642_v12  ;;  %v683_v38 = vpop.permute.xlu1 %682 }
 0x25c   : > { %v662_v29 = vsub.f32 %v1804_v42, %v642_v12  ;;  %v661_v30 = vsub.f32 %v1800_v40, %v642_v12  ;;  %v1042_v12 = vpack.c.bf16 %v1240_v26, %v1239_v25  ;;  %v1241_v14 = vsel %vm998_vm12, 1.0, %v1530_v21 }
 0x25d   : > { %v658_v33 = vsub.f32 %v656_v16, %v657_v17  ;;  %v1242_v16 = vsel %vm999_vm13, 1.0, %v1530_v21  ;;  %v1248_v28 = vsel %vm1005_vm4, 1.0, %v1530_v21  ;;  %v1249_v31 = vsel %vm1006_vm5, 1.0, %v1530_v21 }
 0x25e   : > { %v1058_v15 = vsel %vm385_vm0, %v1042_v12, 0  ;;  %v1043_v17 = vpack.c.bf16 %v1242_v16, %v1241_v14 }
 0x25f   : > { %v663_v37 = vadd.f32 1e-05, %v658_v33  ;;  %v703_v44 = vpop.permute.xlu1 %702 }
 0x260   : > { %v1061_v19 = vsel %vm385_vm0, %v1043_v17, 0 }
 0x261   : > { %1452 = vrsqrt.f32 %v663_v37 }
 0x26b   : > { %v1453_v7 = vpop.eup %1452 }
 0x26c   : > { %v665_v40 = vmul.f32 %v1453_v7, %v659_v18  ;;  %v666_v41 = vmul.f32 %v1453_v7, %v660_v1  ;;  %v668_v42 = vmul.f32 %v1453_v7, %v662_v29  ;;  %v667_v43 = vmul.f32 %v1453_v7, %v661_v30 }
 0x26d   : > { %v1244_v18 = vsel %vm1001_vm15, 1.0, %v1530_v21 }
 0x26e   : > { %v685_v46 = vmul.f32 %v671_v11, %v665_v40  ;;  %v686_v47 = vmul.f32 %v675_v6, %v666_v41  ;;  %v688_v48 = vmul.f32 %v683_v38, %v668_v42  ;;  %v687_v49 = vmul.f32 %v679_v39, %v667_v43  ;;  %v721_v39 = vpop.permute.xlu1 %720  ;;  %v725_v40 = vpop.permute.xlu0 %724 }
 0x26f   : > { %v1238_v11 = vsel %vm995_vm9, 1.0, %v1530_v21  ;;  %v1044_v1 = vpack.c.bf16 %v1244_v18, %v1243_v20  ;;  %v1536_v38 = vmov 1065369472  }
 0x270   : > { %v705_v51 = vadd.f32 %v691_v34, %v685_v46  ;;  %v706_v52 = vadd.f32 %v695_v2, %v686_v47  ;;  %v708_v53 = vadd.f32 %v703_v44, %v688_v48  ;;  %v707_v56 = vadd.f32 %v699_v4, %v687_v49 }
 0x271   : > { %v1041_v8 = vpack.c.bf16 %v1238_v11, %v1237_v9  ;;  %v1064_v29 = vsel %vm385_vm0, %v1044_v1, 0 }
 0x272   : > { %v709_v5 = vmax.f32 %v705_v51, 0.0  ;;  %v710_v59 = vmax.f32 %v706_v52, 0.0  ;;  %v712_v60 = vmax.f32 %v708_v53, 0.0  ;;  %v711_v61 = vmax.f32 %v707_v56, 0.0  ;;  %v729_v35 = vpop.permute.xlu1 %728 }
 0x273   : > { %v1055_v22 = vsel %vm385_vm0, %v1041_v8, 0 }
 0x274   : > { %v714_v55 = vpack.c.bf16 %v712_v60, %v711_v61  ;;  %v713_v62 = vpack.c.bf16 %v710_v59, %v709_v5 }
 0x276   : > { %1315 = vmatprep.subr.bf16.mxu1 %v713_v62  ;;  %v733_v43 = vpop.permute.xlu1 %732 }
 0x277   : > { %1316 = vmatpush3.bf16.msra.mxu1 %v713_v62 }
 0x278   : > { %1317 = vmatprep.subr.bf16.mxu1 %v714_v55 }
 0x27a   : > { %v842_v26 = vpop.permute.xlu1 %841 }
 0x27b   : > { %1318 = vmatpush3.bf16.msra.mxu1 %v714_v55 }
 0x27c   : > { %1323 = vmatprep.subr.bf16.mxu1 %v1530_v21 }
 0x27e   : > { %1320 = vmatmul.mubr.msk.bf16.vlgmr.msra.gmra.mrb[0].mxu1 %vm577_vm1, %v1446_v57  ;;  %vm1002_vm1 = vcmp.ne.f32.partialorder %v1730_v27, 0.0  ;;  %v1247_v27 = vsel %vm1004_vm3, 1.0, %v1530_v21  ;;  %v846_v1 = vpop.permute.xlu1 %845 }
 0x27f   : > { %1324 = vmatpush3.bf16.msk.msra.mxu1 %vm1230_vm6, %v1534_v63  ;;  %1325 = vmatprep.mubr.msk.bf16.mxu1 %vm1535_vm7, %v1530_v21  ;;  %v1245_v23 = vsel %vm1002_vm1, 1.0, %v1530_v21  ;;  %v1046_v34 = vpack.c.bf16 %v1248_v28, %v1247_v27  ;;  %vm1007_vm6 = vcmp.ne.f32.partialorder %v1753_v36, 0.0 }
 0x280   : > { %1337 = vmatprep.subr.bf16.mxu1 %v1530_v21  ;;  %v1045_v30 = vpack.c.bf16 %v1246_v24, %v1245_v23  ;;  %v1250_v32 = vsel %vm1007_vm6, 1.0, %v1530_v21 }
 0x281   : > { %v1070_v37 = vsel %vm385_vm0, %v1046_v34, 0  ;;  %v1047_v6 = vpack.c.bf16 %v1250_v32, %v1249_v31 }
 0x282   : > { %v1067_v33 = vsel %vm385_vm0, %v1045_v30, 0  ;;  %v862_v34 = vpop.permute.xlu1 %861 }
 0x283   : > { %v1073_v2 = vsel %vm385_vm0, %v1047_v6, 0 }
 0x286   : > { %1326 = vmatmul.mubr.msk.bf16.vlgmr.msra.gmra.mrb[4].mxu1 %vm385_vm0, %v1447_v0  ;;  %v850_v31 = vpop.permute.xlu1 %849 }
 0x287   : > { %1329 = vmatprep.mubr.msk.bf16.mxu1 %vm1535_vm7, %v1530_v21 }
 0x288   : > { %1338 = vmatpush3.bf16.xpose.msra.mxu1 %v1052_v3 }
 0x289   : > { %1339 = vmatprep.subr.bf16.mxu1 %v1530_v21 }
 0x28e   : > { %1330 = vmatmul.mubr.msk.bf16.gmra.mrb[8].mxu1 %vm385_vm0, %v1448_v10 }
 0x28f   : > { %1333 = vmatprep.mubr.msk.bf16.mxu1 %vm1535_vm7, %v1530_v21 }
 0x290   : > { %1340 = vmatpush3.bf16.xpose.msra.mxu1 %v1055_v22 }
 0x291   : > { %1341 = vmatprep.subr.bf16.mxu1 %v1530_v21 }
 0x296   : > { %1334 = vmatmul.mubr.msk.bf16.gmra.mrb[12].mxu1 %vm385_vm0, %v1449_v13 }
 0x297   : > { %1353 = vmatprep.mubr.msk.bf16.mxu1 %vm1535_vm7, %v1530_v21 }
 0x298   : > { %1342 = vmatpush3.bf16.xpose.msra.mxu1 %v1058_v15 }
 0x299   : > { %1343 = vmatprep.subr.bf16.mxu1 %v1530_v21 }
 0x2a0   : > { %1344 = vmatpush3.bf16.xpose.msra.mxu1 %v1061_v19 }
 0x2a1   : > { %1345 = vmatprep.subr.bf16.mxu1 %v1530_v21 }
 0x2a8   : > { %1346 = vmatpush3.bf16.xpose.msra.mxu1 %v1064_v29 }
 0x2a9   : > { %1347 = vmatprep.subr.bf16.mxu1 %v1530_v21 }
 0x2b0   : > { %1348 = vmatpush3.bf16.xpose.msra.mxu1 %v1067_v33 }
 0x2b1   : > { %1349 = vmatprep.subr.bf16.mxu1 %v1530_v21 }
 0x2b8   : > { %1350 = vmatpush3.bf16.xpose.msra.mxu1 %v1070_v37  ;;  %v838_v37 = vpop.permute.xlu0 %837 }
 0x2b9   : > { %1351 = vmatprep.subr.bf16.mxu1 %v1530_v21 }
 0x2bc   : > { %v858_v32 = vpop.permute.xlu0 %857 }
 0x2c0   : > { %1352 = vmatpush3.bf16.xpose.msra.mxu1 %v1073_v2 }
 0x2c7   : > { %1354 = vmatmul.mubr.msk.bf16.vlgmr.msra.gmra.mrb[16].mxu1 %vm385_vm0, %v1536_v38 }
 0x351   : > { %v1321_v7 = vpop.f32.mrb[0].mxu1 }
 0x352   : > { %v785_v36 = vpop.f32.mrb[1].mxu1  ;;  %v794_v4 = vadd.f32 %v1321_v7, %v729_v35  ;;  %v870_v7 = vpop.permute.xlu1 %869 }
 0x353   : > { %v786_v41 = vadd.f32 %v785_v36, %v721_v39  ;;  %v1322_v42 = vpop.f32.mrb[2].mxu1  ;;  %v866_v36 = vpop.permute.xlu0 %865 }
 0x354   : > { %v788_v44 = vpop.f32.mrb[3].mxu1  ;;  %v797_v21 = vadd.f32 %v1322_v42, %v733_v43  ;;  %v812_v49 = vmul.f32 %v794_v4, %v794_v4 }
 0x355   : > { %v789_v45 = vadd.f32 %v788_v44, %v725_v40  ;;  %v810_v46 = vmul.f32 %v786_v41, %v786_v41 }
 0x356   : > { %v813_v58 = vmul.f32 %v797_v21, %v797_v21 }
 0x357   : > { %v800_v47 = vadd.f32 %v789_v45, %v786_v41  ;;  %v811_v48 = vmul.f32 %v789_v45, %v789_v45 }
 0x359   : > { %v801_v51 = vadd.f32 %v800_v47, %v794_v4  ;;  %v814_v52 = vadd.f32 %v811_v48, %v810_v46  ;;  %v1912_v53 = vpop.f32.mrb[4].mxu1 }
 0x35a   : > { %v1327_v56 = vpop.f32.mrb[5].mxu1 }
 0x35b   : > { %v802_v5 = vadd.f32 %v801_v51, %v797_v21  ;;  %v815_v59 = vadd.f32 %v814_v52, %v812_v49  ;;  %v959_v60 = vpop.f32.mrb[6].mxu1 }
 0x35c   : > { %v1328_v61 = vpop.f32.mrb[7].mxu1 }
 0x35d   : > { %v803_v55 = vrot.slane %v802_v5, 4  ;;  %v816_v62 = vadd.f32 %v815_v59, %v813_v58 }
 0x35f   : > { %v804_v54 = vadd.f32 %v803_v55, %v802_v5  ;;  %v817_v50 = vrot.slane %v816_v62, 4 }
 0x361   : > { %v805_v57 = vrot.slane %v804_v54, 2  ;;  %v818_v63 = vadd.f32 %v817_v50, %v816_v62  ;;  %v964_v0 = vpop.f32.mrb[8].mxu1 }
 0x362   : > { %v1331_v3 = vpop.f32.mrb[9].mxu1 }
 0x363   : > { %v806_v9 = vadd.f32 %v805_v57, %v804_v54  ;;  %v819_v11 = vrot.slane %v818_v63, 2  ;;  %v967_v8 = vpop.f32.mrb[10].mxu1 }
 0x364   : > { %v1332_v10 = vpop.f32.mrb[11].mxu1 }
 0x365   : > { %v807_v22 = vrot.slane %v806_v9, 1  ;;  %v820_v25 = vadd.f32 %v819_v11, %v818_v63 }
 0x367   : > { %v808_v12 = vadd.f32 %v807_v22, %v806_v9  ;;  %v821_v13 = vrot.slane %v820_v25, 1 }
 0x369   : > { %v809_v15 = vmul.f32 0.03125, %v808_v12  ;;  %v822_v14 = vadd.f32 %v821_v13, %v820_v25  ;;  %v972_v16 = vpop.f32.mrb[12].mxu1 }
 0x36a   : > { %v1335_v17 = vpop.f32.mrb[13].mxu1  ;;  %v1117_v9 = vrot.slane %v972_v16, 1 }
 0x36b   : > { %v823_v19 = vmul.f32 0.03125, %v822_v14  ;;  %v824_v20 = vmul.f32 %v809_v15, %v809_v15  ;;  %v827_v18 = vsub.f32 %v789_v45, %v809_v15  ;;  %v828_v29 = vsub.f32 %v794_v4, %v809_v15  ;;  %v975_v23 = vpop.f32.mrb[14].mxu1 }
 0x36c   : > { %v826_v24 = vsub.f32 %v786_v41, %v809_v15  ;;  %v829_v30 = vsub.f32 %v797_v21, %v809_v15  ;;  %v1336_v33 = vpop.f32.mrb[15].mxu1 }
 0x36d   : > { %v825_v27 = vsub.f32 %v823_v19, %v824_v20 }
 0x36f   : > { %v830_v28 = vadd.f32 1e-05, %v825_v27 }
 0x371   : > { %1454 = vrsqrt.f32 %v830_v28 }
 0x37b   : > { %v1455_v6 = vpop.eup %1454 }
 0x37c   : > { %v833_v2 = vmul.f32 %v1455_v6, %v827_v18  ;;  %v834_v38 = vmul.f32 %v1455_v6, %v828_v29  ;;  %v832_v39 = vmul.f32 %v1455_v6, %v826_v24  ;;  %v835_v35 = vmul.f32 %v1455_v6, %v829_v30 }
 0x37e   : > { %v853_v40 = vmul.f32 %v842_v26, %v833_v2  ;;  %v854_v42 = vmul.f32 %v846_v1, %v834_v38  ;;  %v852_v43 = vmul.f32 %v838_v37, %v832_v39  ;;  %v855_v41 = vmul.f32 %v850_v31, %v835_v35 }
 0x380   : > { %v873_v44 = vadd.f32 %v862_v34, %v853_v40  ;;  %v872_v4 = vadd.f32 %v858_v32, %v852_v43  ;;  %v875_v45 = vadd.f32 %v870_v7, %v855_v41  ;;  %v874_v46 = vadd.f32 %v866_v36, %v854_v42 }
 0x382   : > { %v877_v21 = vmax.f32 %v873_v44, 0.0  ;;  %v876_v47 = vmax.f32 %v872_v4, 0.0  ;;  %v879_v48 = vmax.f32 %v875_v45, 0.0  ;;  %v878_v49 = vmax.f32 %v874_v46, 0.0 }
 0x384   : > { %v979_v51 = vmul.f32 %v959_v60, %v877_v21  ;;  %v978_v52 = vmul.f32 %v1912_v53, %v876_v47  ;;  %v980_v56 = vmul.f32 %v964_v0, %v878_v49  ;;  %v981_v58 = vmul.f32 %v967_v8, %v879_v48 }
 0x385   : > { %v1120_v60 = vstv %s322_s26 }
 0x386   : > { %v982_v5 = vadd.f32 %v979_v51, %v978_v52 }
 0x388   : > { %v983_v59 = vadd.f32 %v982_v5, %v980_v56 }
 0x38a   : > { %v984_v61 = vadd.f32 %v983_v59, %v981_v58 }
 0x38c   : > { %v985_v55 = vrot.slane %v984_v61, 4 }
 0x38e   : > { %v986_v62 = vadd.f32 %v985_v55, %v984_v61 }
 0x390   : > { %v987_v54 = vrot.slane %v986_v62, 2 }
 0x392   : > { %v988_v50 = vadd.f32 %v987_v54, %v986_v62 }
 0x394   : > { %v989_v57 = vrot.slane %v988_v50, 1 }
 0x396   : > { %v990_v63 = vadd.f32 %v989_v57, %v988_v50 }
 0x398   : > { %v991_v3 = vadd.f32 %v990_v63, %v972_v16 }
 0x39a   : > { %v1109_v11 = vpop.f32.mrb[16].mxu1 }
 0x39b   : > { %vm1115_vm0 = vcmp.eq.f32.partialorder %v1109_v11, 0.0  ;;  %v1355_v53 = vpop.f32.mrb[17].mxu1 }
 0x39c   : > { %v1119_v0 = vsel %vm1115_vm0, %v1117_v9, %v991_v3  ;;  %v1112_v8 = vpop.f32.mrb[18].mxu1 }
 0x39d   : > { %v1121_v10 = vmul.f32 %v1120_v60, %v1119_v0  ;;  %v1356_v22 = vpop.f32.mrb[19].mxu1 }
 0x39f   : > { %v1252_v25 = vmul.f32 -1.442695, %v1121_v10 }
 0x3a1   : > { %1456 = vpow2.f32 %v1252_v25 }
 0x3ab   : > { %v1457_v26 = vpop.eup %1456 }
 0x3ac   : > { %v1125_v12 = vadd.f32 1.0, %v1457_v26 }
 0x3ae   : > { %1458 = vrcp.f32 %v1125_v12 }
 0x3b8   : > { %v1459_v13 = vpop.eup %1458 }
 0x3b9   : > { %1128 = vst [vmem:[%s310_s28] sm:$0x1] %v1459_v13 }
 0x3ba   : > { %1473 = shalt.err (!%p1470_p4)
}
 0x3bb   : > { %s1474_s18 = scalar_lea.hbm %s1920_s19, 16  ;;  %s1478_s26 = scalar_lea.hbm %s1970_s8, 32 }
 0x3bc   : > { %p1475_p7 = scmp.ne.s32.totalorder %s1920_s19, %s1474_s18  ;;  %p1479_p10 = scmp.lt.u32.totalorder %s1920_s19, %s1970_s8 }
 0x3bd   : > { %p1480_p11 = scmp.lt.u32.totalorder %s1478_s26, %s1474_s18  ;;  %p1482_p13 = scmp.lt.u32.totalorder %s1474_s18, %s1920_s19 }
 0x3be   : > { %p1476_p8 = pnand %p1475_p7, %p1624_p5 }
 0x3bf   : > { %p1481_p12 = por %p1480_p11, %p1479_p10 }
 0x3c0   : > { %p1477_p9 = pneg %p1476_p8 }
 0x3c1   : > { %p1483_p0 = por %p1482_p13, %p1481_p12 }
 0x3c3   : > { %p1484_p1 = pnand %p1483_p0, %p1477_p9 }
 0x3c5   : > { %1487 = shalt.err (!%p1484_p1)
}
 0x3c6   : > { %1365 = dma.vmem_to_hbm [thread:$0]  (%p1624_p5), %s1922_s11, 16, %s1920_s19, %s1130_s20  }
 0x3c7 PF: > { %p1371_p2 = scmp.ge.s32.totalorder %s1522_s10, 2  ;;  %s1154_s13 = sand.u32 1, %s1510_s29  }
 0x3c8   : > { %s1155_s14 = scalar_lea.sflag [#allocation4], %s1154_s13 }
 0x3c9   : > { %p1368_p3 = pnand %p1371_p2, %p1628_p6 }
 0x3cb   : > { %1505 = dma.done.wait (!%p1368_p3), %s1155_s14, 16  }
 0x3cc   : > { %1507 = vsyncadd (!%p1368_p3), %s1155_s14, 4294967280  ;;  %p19_p4 = scmp.ge.s32.totalorder %s1611_s12, 4   ;;  %s1973_s29 = smov %s1514_s30 }
 0x3cd   : > { %s1974_s30 = smov %s1518_s9  ;;  %s1975_s9 = smov %s1622_s15 }
 0x3ce   : > { %s1976_s10 = smov %s1611_s12  ;;  %21 = sbr.rel (!%p19_p4) target bundleno = 5 (0x5), region = 90 }
 0x3d5   :  { %1159 = vsyncpa [#allocation4], 1 }
 0x3d6   :  { %1161 = vsyncpa [#allocation4 + $0x1], 1 }

</bundles_post_ra>
